<compile_context>
chip_gen: v6e
topology: v6e:2x2x1
jax: 0.10.0
libtpu: 0.0.40
codegen_flags: <defaults>
</compile_context>

<pallas_src>
import functools

import numpy as np
import jax
import jax.numpy as jnp
from jax.experimental import pallas as pl
from jax.experimental.pallas import tpu as pltpu


# ----------------------------------------------------------------------------
# Helpers
# ----------------------------------------------------------------------------
def _pick_tile(total, cap, mult):
    """Largest divisor of `total` that is <= cap and a multiple of `mult`.

    Falls back to `total` (full-dim block) if no such divisor exists.
    """
    for t in range(min(total, cap), 0, -1):
        if total % t == 0 and t % mult == 0:
            return t
    return total


# ----------------------------------------------------------------------------
# Pallas kernels
# ----------------------------------------------------------------------------
def _conv_kernel(x_ref, w_ref, b_ref, o_ref, *, act):
    """Conv tile as a single MXU matmul (+ bias + activation).

    x_ref: (1, hw_tile, K*Cin)  bf16 im2col taps (channel-concatenated)
    w_ref: (K*Cin, Cout)        bf16
    b_ref: (1, Cout)            f32
    o_ref: (1, hw_tile, Cout)
    """
    acc = jnp.dot(x_ref[0], w_ref[...], preferred_element_type=jnp.float32)
    acc = acc + b_ref[...]
    if act == "relu":
        acc = jnp.maximum(acc, 0.0)
    o_ref[0] = acc.astype(o_ref.dtype)


def conv_mm(x_taps, w, b, act, out_dtype):
    """x_taps: (N, HW, KC), w: (KC, Cout), b: (1, Cout) -> (N, HW, Cout)."""
    N, HW, KC = x_taps.shape
    Cout = w.shape[-1]
    hw_tile = _pick_tile(HW, 512, 8)
    kernel = functools.partial(_conv_kernel, act=act)
    return pl.pallas_call(
        kernel,
        out_shape=jax.ShapeDtypeStruct((N, HW, Cout), out_dtype),
        grid_spec=pltpu.PrefetchScalarGridSpec(
            num_scalar_prefetch=0,
            grid=(N, HW // hw_tile),
            in_specs=[
                pl.BlockSpec((1, hw_tile, KC), lambda n, t: (n, t, 0)),
                pl.BlockSpec((KC, Cout), lambda n, t: (0, 0)),
                pl.BlockSpec((1, Cout), lambda n, t: (0, 0)),
            ],
            out_specs=pl.BlockSpec((1, hw_tile, Cout), lambda n, t: (n, t, 0)),
        ),
        compiler_params=pltpu.CompilerParams(
            dimension_semantics=("parallel", "parallel")),
    )(x_taps, w, b)


def _heads_kernel(x_ref, we_ref, be_ref, wu_ref, bu_ref, eta_ref, up_ref, *,
                  cin):
    """Fused eta + upmask heads reading the h2 tap block once.

    x_ref : (1, hw_tile, 9*Cin) bf16 taps of h2
    we_ref: (9*Cin, 128)  bf16  eta 3x3 weight, zero-padded from Cout=1
    be_ref: (1, 128)      f32   eta bias, zero-padded
    wu_ref: (Cin, 576)    bf16  upmask 1x1 weight
    bu_ref: (1, 576)      f32
    eta_ref: (1, hw_tile, 128) f32   (only lane 0 is meaningful)
    up_ref : (1, hw_tile, 576) f32
    """
    taps = x_ref[0]                                        # (hw, 9*Cin)

    # eta: 3x3 conv -> GradientClip (identity fwd) -> Softplus -> *0.01
    e = jnp.dot(taps, we_ref[...], preferred_element_type=jnp.float32)
    e = e + be_ref[...]
    e = jnp.maximum(e, 0.0) + jnp.log(1.0 + jnp.exp(-jnp.abs(e)))  # stable softplus
    eta_ref[0] = (0.01 * e).astype(eta_ref.dtype)

    # upmask: 1x1 conv on the center tap (tap index 4 == un-shifted image)
    center = taps[:, 4 * cin:5 * cin]                      # lane-aligned slice
    u = jnp.dot(center, wu_ref[...], preferred_element_type=jnp.float32)
    up_ref[0] = (u + bu_ref[...]).astype(up_ref.dtype)


def heads_fused(h2_taps, we, be, wu, bu):
    """h2_taps: (N, HW, 9*Cin) -> (eta (N,HW,128), upmask (N,HW,576))."""
    N, HW, KC = h2_taps.shape
    Cin = KC // 9
    Ce = we.shape[-1]
    Cu = wu.shape[-1]
    hw_tile = _pick_tile(HW, 512, 8)
    kernel = functools.partial(_heads_kernel, cin=Cin)
    return pl.pallas_call(
        kernel,
        out_shape=(jax.ShapeDtypeStruct((N, HW, Ce), jnp.float32),
                   jax.ShapeDtypeStruct((N, HW, Cu), jnp.float32)),
        grid_spec=pltpu.PrefetchScalarGridSpec(
            num_scalar_prefetch=0,
            grid=(N, HW // hw_tile),
            in_specs=[
                pl.BlockSpec((1, hw_tile, KC), lambda n, t: (n, t, 0)),
                pl.BlockSpec((KC, Ce), lambda n, t: (0, 0)),
                pl.BlockSpec((1, Ce), lambda n, t: (0, 0)),
                pl.BlockSpec((Cin, Cu), lambda n, t: (0, 0)),
                pl.BlockSpec((1, Cu), lambda n, t: (0, 0)),
            ],
            out_specs=[
                pl.BlockSpec((1, hw_tile, Ce), lambda n, t: (n, t, 0)),
                pl.BlockSpec((1, hw_tile, Cu), lambda n, t: (n, t, 0)),
            ],
        ),
        compiler_params=pltpu.CompilerParams(
            dimension_semantics=("parallel", "parallel")),
    )(h2_taps, we, be, wu, bu)


def _scatter_mean_kernel(a_ref, x_ref, o_ref):
    """scatter_mean as an aggregation matmul.

    a_ref: (nu, num) f32  normalized one-hot (rows sum to 1)
    x_ref: (1, num, ftile) bf16
    o_ref: (1, nu, ftile)
    """
    o_ref[0] = jnp.dot(a_ref[...], x_ref[0].astype(jnp.float32),
                       preferred_element_type=jnp.float32).astype(o_ref.dtype)


def scatter_mean_matmul(agg, x, out_dtype):
    """agg: (nu, num), x: (B, num, F) -> (B, nu, F)."""
    B, num, F = x.shape
    nu = agg.shape[0]
    ftile = _pick_tile(F, 8192, 128)   # F = HW*128, so a 128-multiple always exists
    return pl.pallas_call(
        _scatter_mean_kernel,
        out_shape=jax.ShapeDtypeStruct((B, nu, F), out_dtype),
        grid_spec=pltpu.PrefetchScalarGridSpec(
            num_scalar_prefetch=0,
            grid=(B, F // ftile),
            in_specs=[
                pl.BlockSpec((nu, num), lambda b, f: (0, 0)),
                pl.BlockSpec((1, num, ftile), lambda b, f: (b, 0, f)),
            ],
            out_specs=pl.BlockSpec((1, nu, ftile), lambda b, f: (b, 0, f)),
        ),
        compiler_params=pltpu.CompilerParams(
            dimension_semantics=("parallel", "parallel")),
    )(agg, x)


# ----------------------------------------------------------------------------
# Plain-JAX glue
# ----------------------------------------------------------------------------
def _im2col_3x3_cat(x):
    """x: (N, H, W, C) -> (N, H*W, 9*C); zero pad=1, taps concatenated on C.

    Tap order dy*3+dx matches the (kh*kw*Cin, Cout) weight row layout.
    """
    N, H, W, C = x.shape
    xp = jnp.pad(x, ((0, 0), (1, 1), (1, 1), (0, 0)))
    taps = [xp[:, dy:dy + H, dx:dx + W, :]
            for dy in range(3) for dx in range(3)]
    return jnp.concatenate(taps, axis=-1).reshape(N, H * W, 9 * C)


def init_params(key):
    ks = jax.random.split(key, 8)

    def conv_w(k, kh, kw, cin, cout):
        scale = 1.0 / np.sqrt(cin * kh * kw)
        return scale * jax.random.normal(k, (kh * kw * cin, cout), jnp.float32)

    return {
        "conv1_w": conv_w(ks[0], 3, 3, 128, 128),            # (1152, 128)
        "conv1_b": 0.01 * jax.random.normal(ks[1], (1, 128), jnp.float32),
        "conv2_w": conv_w(ks[2], 3, 3, 128, 128),            # (1152, 128)
        "conv2_b": 0.01 * jax.random.normal(ks[3], (1, 128), jnp.float32),
        "eta_w": conv_w(ks[4], 3, 3, 128, 1),                # (1152, 1)
        "eta_b": 0.01 * jax.random.normal(ks[5], (1, 1), jnp.float32),
        "upmask_w": conv_w(ks[6], 1, 1, 128, 8 * 8 * 9),     # (128, 576)
        "upmask_b": 0.01 * jax.random.normal(ks[7], (1, 8 * 8 * 9), jnp.float32),
    }


def graph_agg_forward(params, net, ii):
    """net: (batch, num, 128, ht, wd) f32 (PyTorch NCHW); ii: (num,) ints (host)."""
    batch, num, ch, ht, wd = net.shape
    assert ch == 128
    HW = ht * wd

    # torch.unique(ii, return_inverse=True): data-dependent output size ->
    # computed host-side (it determines output shapes, just as in PyTorch).
    ii_np = np.asarray(ii)
    _, ix = np.unique(ii_np, return_inverse=True)
    nu = int(ix.max()) + 1
    counts = np.bincount(ix, minlength=nu).astype(np.float32)
    agg = (np.arange(nu)[:, None] == ix[None, :]).astype(np.float32)
    agg = jnp.asarray(agg / counts[:, None])           # (nu, num), rows sum to 1

    # bf16 weights for the MXU; biases stay f32 (accumulation is f32).
    w1 = params["conv1_w"].astype(jnp.bfloat16)
    w2 = params["conv2_w"].astype(jnp.bfloat16)
    we = jnp.pad(params["eta_w"], ((0, 0), (0, 127))).astype(jnp.bfloat16)
    be = jnp.pad(params["eta_b"], ((0, 0), (0, 127)))
    wu = params["upmask_w"].astype(jnp.bfloat16)

    # NCHW -> kernel layout (N, H, W, C), bf16 activations
    x = jnp.transpose(net.reshape(batch * num, ch, ht, wd), (0, 2, 3, 1))
    x = x.astype(jnp.bfloat16)

    # conv1 (3x3, pad 1) + ReLU : one K=1152 MXU contraction per HW tile
    h1 = conv_mm(_im2col_3x3_cat(x), w1, params["conv1_b"], "relu",
                 jnp.bfloat16)                               # (B*num, HW, 128)

    # scatter_mean over the frame index (dim=1 of (batch, num, ...))
    F = HW * 128
    hm = scatter_mean_matmul(agg, h1.reshape(batch, num, F), jnp.bfloat16)
    hm = hm.reshape(batch * nu, ht, wd, 128)

    # conv2 (3x3, pad 1) + ReLU
    h2 = conv_mm(_im2col_3x3_cat(hm), w2, params["conv2_b"], "relu",
                 jnp.bfloat16)                               # (B*nu, HW, 128)
    h2_img = h2.reshape(batch * nu, ht, wd, 128)

    # fused heads: eta (3x3 conv -> softplus -> *0.01) and upmask (1x1 conv)
    # read the h2 tap block once; eta output is lane-padded to 128.
    h2_taps = _im2col_3x3_cat(h2_img)
    eta_pad, up = heads_fused(h2_taps, we, be, wu, params["upmask_b"])

    eta = eta_pad[..., 0].reshape(batch, nu, ht, wd)         # (B, nu, ht, wd)
    up = up.reshape(batch, nu, ht, wd, 8 * 8 * 9)
    up = jnp.transpose(up, (0, 1, 4, 2, 3))                  # (B, nu, 576, ht, wd)
    return eta, up


if __name__ == "__main__":
    key = jax.random.PRNGKey(0)
    kp, kn = jax.random.split(key)
    params = init_params(kp)

    batch, num, ch, ht, wd = 2, 6, 128, 8, 8
    net = jax.random.normal(kn, (batch, num, ch, ht, wd), jnp.float32)
    ii = np.array([0, 3, 3, 1, 0, 7], dtype=np.int32)   # 4 unique frames -> nu = 4

    eta, upmask = graph_agg_forward(params, net, ii)
    (eta, upmask) = jax.block_until_ready((eta, upmask))

    assert eta.shape == (batch, 4, ht, wd), eta.shape
    assert upmask.shape == (batch, 4, 8 * 8 * 9, ht, wd), upmask.shape
    assert bool(jnp.all(jnp.isfinite(eta))) and bool(jnp.all(jnp.isfinite(upmask)))
    assert bool(jnp.all(eta >= 0.0))  # 0.01 * softplus(...) is non-negative
    print("KERNEL_OK")
</pallas_src>

<mosaic_0001>
module attributes {stable_mosaic.version = 11 : i64} {
  func.func @_conv_kernel(%arg0: i32, %arg1: i32, %arg2: memref<1x64x1152xbf16, #tpu.memory_space<vmem>>, %arg3: memref<1152x128xbf16, #tpu.memory_space<vmem>>, %arg4: memref<1x128xf32, #tpu.memory_space<vmem>>, %arg5: memref<1x64x128xbf16, #tpu.memory_space<vmem>>) attributes {dimension_semantics = [#tpu.dimension_semantics<parallel>, #tpu.dimension_semantics<parallel>], iteration_bounds = array<i64: 12, 1>, scalar_prefetch = 0 : i64, scratch_operands = 0 : i64, tpu.core_type = #tpu.core_type<tc>, window_params = [{transform_indices = @transform_0, window_bounds = array<i64: 1, 64, 1152>}, {pipeline_mode = #tpu.pipeline_mode<synchronous>, transform_indices = @transform_1, window_bounds = array<i64: 1152, 128>}, {pipeline_mode = #tpu.pipeline_mode<synchronous>, transform_indices = @transform_2, window_bounds = array<i64: 1, 128>}, {transform_indices = @transform_3, window_bounds = array<i64: 1, 64, 128>}]} {
    %c0 = arith.constant 0 : index
    %c0_0 = arith.constant 0 : index
    %c0_1 = arith.constant 0 : index
    %0 = vector.load %arg2[%c0, %c0_0, %c0_1] : memref<1x64x1152xbf16, #tpu.memory_space<vmem>>, vector<1x64x1152xbf16>
    %1 = vector.shape_cast %0 : vector<1x64x1152xbf16> to vector<64x1152xbf16>
    %c0_2 = arith.constant 0 : index
    %c0_3 = arith.constant 0 : index
    %2 = vector.load %arg3[%c0_2, %c0_3] : memref<1152x128xbf16, #tpu.memory_space<vmem>>, vector<1152x128xbf16>
    %cst = arith.constant dense<0.000000e+00> : vector<64x128xf32>
    %3 = tpu.matmul %1, %2, %cst {dimension_numbers = #tpu.dot_dimension_numbers<[1], [0], [0], [1], [0, 0, 1, 1], [], []>} : vector<64x1152xbf16>, vector<1152x128xbf16>, vector<64x128xf32> -> vector<64x128xf32>
    %c0_4 = arith.constant 0 : index
    %c0_5 = arith.constant 0 : index
    %4 = vector.load %arg4[%c0_4, %c0_5] : memref<1x128xf32, #tpu.memory_space<vmem>>, vector<1x128xf32>
    %5 = vector.broadcast %4 : vector<1x128xf32> to vector<64x128xf32>
    %6 = arith.addf %3, %5 : vector<64x128xf32>
    %cst_6 = arith.constant 0.000000e+00 : f32
    %7 = vector.broadcast %cst_6 : f32 to vector<64x128xf32>
    %8 = arith.maximumf %6, %7 : vector<64x128xf32>
    %9 = arith.truncf %8 : vector<64x128xf32> to vector<64x128xbf16>
    %c0_7 = arith.constant 0 : index
    %c0_8 = arith.constant 0 : index
    %c0_9 = arith.constant 0 : index
    %10 = vector.load %arg5[%c0_7, %c0_8, %c0_9] : memref<1x64x128xbf16, #tpu.memory_space<vmem>>, vector<1x64x128xbf16>
    %11 = vector.shape_cast %10 : vector<1x64x128xbf16> to vector<64x128xbf16>
    %12 = vector.shape_cast %9 : vector<64x128xbf16> to vector<1x64x128xbf16>
    tpu.vector_store %arg5[%c0_7, %c0_8, %c0_9], %12 {strides = array<i32>} : memref<1x64x128xbf16, #tpu.memory_space<vmem>>, vector<1x64x128xbf16>,
    return
  }
  func.func @transform_0(%arg0: i32, %arg1: i32) -> (i32, i32, i32) {
    %c0_i32 = arith.constant 0 : i32
    %c0_i32_0 = arith.constant 0 : i32
    return %arg0, %arg1, %c0_i32 : i32, i32, i32
  }
  func.func @transform_1(%arg0: i32, %arg1: i32) -> (i32, i32) {
    %c0_i32 = arith.constant 0 : i32
    %c0_i32_0 = arith.constant 0 : i32
    %c0_i32_1 = arith.constant 0 : i32
    return %c0_i32, %c0_i32_0 : i32, i32
  }
  func.func @transform_2(%arg0: i32, %arg1: i32) -> (i32, i32) {
    %c0_i32 = arith.constant 0 : i32
    %c0_i32_0 = arith.constant 0 : i32
    %c0_i32_1 = arith.constant 0 : i32
    return %c0_i32, %c0_i32_0 : i32, i32
  }
  func.func @transform_3(%arg0: i32, %arg1: i32) -> (i32, i32, i32) {
    %c0_i32 = arith.constant 0 : i32
    %c0_i32_0 = arith.constant 0 : i32
    return %arg0, %arg1, %c0_i32 : i32, i32, i32
  }
}

</mosaic_0001>

<bundles_post_ra>
// kernel: tpu_custom_call.1
= control target key start
LH: loop header
LB: loop body
LE: loop exit
PB: predicated region body
PF: predicated region fallthrough
CT: control target
= control target key end

     0   :  { %8 = vsyncpa [#allocation3], 0  ;;  %s2618_s0 = inlined_call_operand.hbm [shape: bf16[12,64,1152], index: 0, kind: input, shape index: {}]   ;;  %s2619_s1 = inlined_call_operand.hbm [shape: bf16[1152,128], index: 1, kind: input, shape index: {}]   ;;  %s2620_s2 = inlined_call_operand.hbm [shape: f32[1,128], index: 2, kind: input, shape index: {}]   ;;  %s2621_s3 = inlined_call_operand.hbm [shape: bf16[12,64,128], index: 3, kind: output, shape index: {}]  }
   0x1   :  { %10 = vsyncpa [#allocation3 + $0x1], 0 }
   0x2   :  { %11 = vsyncpa [#allocation6], 0 }
   0x3   :  { %12 = vsyncpa [#allocation4], 0 }
   0x4   :  { %14 = vsyncpa [#allocation4 + $0x1], 0  ;;  %s2329_s12 = smov 0   ;;  %s2331_s13 = smov 0  }
   0x5   :  { %s2333_s14 = smov 0   ;;  %s2335_s15 = smov 0  }
   0x6   :  { %s2337_s16 = smov 0   ;;  %s2339_s17 = smov 0  }
   0x7 LB: > { %s1540_s18 = sadd.s32 4294967295, %s2297_s17   ;;  %s1541_s19 = sadd.s32 4294967294, %s2297_s17   ;;  %s2297_s17 = sphi %s2339_s17, %s20_s17   ;;  %s2293_s16 = sphi %s2337_s16, %s2646_s16   ;;  %s2289_s15 = sphi %s2335_s15, %s2645_s15   ;;  %s2285_s14 = sphi %s2333_s14, %s2644_s14   ;;  %s2281_s13 = sphi %s2331_s13, %s2643_s13   ;;  %s2277_s12 = sphi %s2329_s12, %s2642_s12  }
   0x8   : > { %p54_p0 = scmp.ne.s32.totalorder %s2281_s13, %s2277_s12  ;;  %p2363_p1 = scmp.eq.s32.totalorder %s1540_s18, 0 }
   0x9   : > { %p2367_p2 = scmp.eq.s32.totalorder %s1540_s18, 11  ;;  %p128_p3 = scmp.eq.s32.totalorder %s1541_s19, 11 }
   0xa   : > { %s2624_s20 = scalar_select %p2363_p1, 1, 0 }
   0xb   : > { %p2373_p4 = por %p2363_p1, %p54_p0  ;;  %p1542_p5 = scmp.ge.s32.totalorder %s2297_s17, 1 }
   0xc   : > { %p2378_p6 = por %p128_p3, %p54_p0  ;;  %p135_p7 = scmp.lt.s32.totalorder %s2297_s17, 13 }
   0xd   : > { %s2299_s25 = smov [#allocation5]   ;;  %s2300_s28 = smov [#allocation7]  }
   0xe   : > { %s2627_s23 = scalar_select %p2378_p6, 1, 0 }
   0xf   : > { %p2383_p8 = pnand %p1542_p5, %p135_p7  ;;  %s147_s26 = sshll.u32 %s2299_s25, 4  ;;  %s148_s26 = int_to_ptr.vmem [resolvable:$true] %s147_s26 }
  0x10   : > { %s161_s29 = sshll.u32 %s2300_s28, 4  ;;  %s2144_s30 = scalar_lea.vmem %s148_s26, 9216  ;;  %s162_s29 = int_to_ptr.vmem [resolvable:$true] %s161_s29 }
  0x11   : > { %p1932_p9 = pneg %p2383_p8  ;;  %p2145_p12 = scmp.ne.s32.totalorder %s148_s26, %s2144_s30 }
  0x12   : > { %p2152_p3 = scmp.lt.s32.totalorder %s148_s26, %s148_s26  ;;  %p2153_p5 = scmp.lt.s32.totalorder %s2144_s30, %s2144_s30 }
  0x13   : > { %p2391_p10 = pnand %p1932_p9, %p2363_p1 }
  0x14   : > { %p2154_p7 = por %p2153_p5, %p2152_p3 }
  0x15   : > { %p2135_p11 = pneg %p2391_p10 }
  0x17   : > { %p2147_p13 = pnand %p2145_p12, %p2135_p11 }
  0x19   : > { %p2148_p0 = pneg %p2147_p13 }
  0x1b   : > { %p2155_p9 = pnand %p2154_p7, %p2148_p0 }
  0x1d   : > { %2158 = shalt.err (!%p2155_p9)
}
  0x1e   : > { %s2301_s4 = smov 64   ;;  %s2302_s5 = smov 4  }
  0x1f   : > { %1935 = dma.hbm_to_vmem [thread:$0]  (!%p2391_p10), %s2619_s1, 9216, %s148_s26, [#allocation6], %s2301_s4, %s2301_s4, %s2302_s5  }
  0x20   : > { %s2170_s8 = scalar_lea.vmem %s162_s29, 16  ;;  %s2177_s9 = scalar_lea.vmem %s162_s29, 32 }
  0x21   : > { %p2171_p6 = scmp.ne.s32.totalorder %s162_s29, %s2170_s8  ;;  %p2178_p1 = scmp.lt.s32.totalorder %s162_s29, %s162_s29 }
  0x22   : > { %p2179_p3 = scmp.lt.s32.totalorder %s2177_s9, %s2170_s8 }
  0x23   : > { %p2173_p12 = pnand %p2171_p6, %p2135_p11 }
  0x24   : > { %p2180_p0 = por %p2179_p3, %p2178_p1 }
  0x25   : > { %p2174_p13 = pneg %p2173_p12 }
  0x27   : > { %p2181_p5 = pnand %p2180_p0, %p2174_p13 }
  0x29   : > { %2184 = shalt.err (!%p2181_p5)
}
  0x2a   : > { %1938 = dma.hbm_to_vmem [thread:$0]  (!%p2391_p10), %s2620_s2, 16, %s162_s29, [#allocation6]  }
  0x2b   : > { %s32_s18 = sadd.s32 1, %s2293_s16  ;;  %s41_s19 = sadd.s32 1, %s2285_s14 }
  0x2c   : > { %p34_p1 = scmp.ge.s32.totalorder %s32_s18, 12  ;;  %p48_p6 = scmp.ne.s32.totalorder %s2285_s14, %s2281_s13 }
  0x2d   : > { %p49_p11 = scmp.eq.s32.totalorder %s2297_s17, 0  ;;  %p1949_p7 = scmp.lt.s32.totalorder %s2297_s17, 12 }
  0x2e   : > { %s2648_s18 = smov (%p34_p1, %s32_s18), 0  ;;  %p2423_p12 = por %p2367_p2, %p48_p6 }
  0x2f   : > { %p50_p9 = por %p49_p11, %p48_p6  ;;  %s36_s26 = ssub.s32 %s2293_s16, %s2648_s18 }
  0x30   : > { %s172_s27 = sand.u32 1, %s2285_s14   ;;  %p39_p13 = scmp.eq.s32.totalorder %s36_s26, 0 }
  0x31   : > { %s1917_s28 = smul.u32 288, %s172_s27  ;;  %p2430_p10 = pnand %p1949_p7, %p50_p9 }
  0x32   : > { %s2435_s30 = scalar_select %p39_p13, %s2285_s14, %s41_s19  }
  0x33   : > { %s1918_s4 = smul.u32 4608, %s2293_s16  ;;  %s176_s5 = scalar_lea.vmem [#allocation2], %s1917_s28 }
  0x34   : > { %s186_s6 = sshll.u32 %s176_s5, 4  ;;  %s173_s9 = scalar_lea.sflag [#allocation3], %s172_s27  ;;  %s187_s6 = int_to_ptr.vmem [resolvable:$true] %s186_s6 }
  0x35   : > { %s185_s8 = scalar_lea.hbm %s2618_s0, %s1918_s4  ;;  %p2187_p2 = pneg %p2430_p10 }
  0x36   : > { %s2198_s10 = scalar_lea.vmem %s187_s6, 4608  ;;  %s2303_s11 = smov [#allocation2]  }
  0x37   : > { %p2199_p3 = scmp.ne.s32.totalorder %s187_s6, %s2198_s10  ;;  %s2203_s26 = sshll.u32 %s2303_s11, 4  ;;  %s2204_s26 = int_to_ptr.vmem [resolvable:$false] %s2203_s26 }
  0x38   : > { %s2205_s19 = scalar_lea.vmem %s2204_s26, 9216  ;;  %p2206_p1 = scmp.lt.s32.totalorder %s187_s6, %s2204_s26 }
  0x39   : > { %p2201_p0 = pnand %p2199_p3, %p2187_p2  ;;  %p2207_p6 = scmp.lt.s32.totalorder %s2205_s19, %s2198_s10 }
  0x3b   : > { %p2202_p5 = pneg %p2201_p0  ;;  %p2208_p11 = por %p2207_p6, %p2206_p1 }
  0x3d   : > { %p2209_p7 = pnand %p2208_p11, %p2202_p5 }
  0x3f   : > { %2212 = shalt.err (!%p2209_p7)
}
  0x40   : > { %s2304_s28 = smov 576   ;;  %s2305_s4 = smov 36  }
  0x41   : > { %1942 = dma.hbm_to_vmem [thread:$0]  (!%p2430_p10), %s185_s8, 4608, %s187_s6, %s173_s9, %s2304_s28, %s2304_s28, %s2305_s4  }
  0x42   : > { %198 = sbr.rel (%p2383_p8) target bundleno = 398 (0x18e), region = 32 }
  0x47   : > { %s2448_s27 = sand.u32 1, %s2281_s13  }
  0x48   : > { %s1919_s5 = smul.u32 288, %s2448_s27  ;;  %s201_s7 = scalar_lea.sflag [#allocation3], %s2448_s27 }
  0x4a   : > { %s2452_s21 = scalar_lea.vmem [#allocation2], %s1919_s5 }
  0x4b   : > { %2264 = dma.done.wait (%p2373_p4), %s201_s7, 4608  }
  0x4c   : > { %2266 = vsyncadd (%p2373_p4), %s201_s7, 4294962688  ;;  %p2632_p9 = scmp.ne.s32.totalorder %s2624_s20, 0 }
  0x4e   : > { %2268 = dma.done.wait (%p2632_p9), [#allocation6], 9232  }
  0x4f   : > { %2270 = vsyncadd (%p2632_p9), [#allocation6], 4294958064  ;;  %v2009_v0 = vld [vmem:[#allocation5 + $0x78] sm:$0xff]   ;;  %v2013_v4 = vld [vmem:[#allocation5 + $0x70] sm:$0xff]   ;;  %s1550_s20 = sshll.u32 %s2448_s27, 5  ;;  %s1681_s29 = sshll.u32 %s2289_s15, 9 }
  0x50   : > { %v2010_v1 = vld [vmem:[#allocation5 + $0xf8] sm:$0xff]   ;;  %1705 = vmatprep.subr.bf16.mxu0 %v2009_v0  ;;  %v2014_v5 = vld [vmem:[#allocation5 + $0xf0] sm:$0xff]   ;;  %v2017_v8 = vld [vmem:[#allocation5 + $0x68] sm:$0xff]   ;;  %s234_s22 = scalar_lea.vmem [#allocation8], %s1550_s20  ;;  %s2571_s9 = scalar_lea.hbm %s2621_s3, %s1681_s29 }
  0x51   : > { %v2011_v2 = vld [vmem:[#allocation5 + $0x38] sm:$0xff]   ;;  %1745 = vmatprep.subr.bf16.mxu1 %v2010_v1  ;;  %v2015_v6 = vld [vmem:[#allocation5 + $0x30] sm:$0xff]   ;;  %v2018_v9 = vld [vmem:[#allocation5 + $0xe8] sm:$0xff]   ;;  %s1434_s24 = sshll.u32 %s234_s22, 4  ;;  %s1419_s15 = scalar_lea.sflag [#allocation4], %s2448_s27  ;;  %s2566_s24 = int_to_ptr.vmem [resolvable:$true] %s1434_s24 }
  0x52   : > { %v2012_v3 = vld [vmem:[#allocation5 + $0xb8] sm:$0xff]   ;;  %1706 = vmatpush3.bf16.msra.mxu0 %v2011_v2  ;;  %v2016_v7 = vld [vmem:[#allocation5 + $0xb0] sm:$0xff]   ;;  %v2019_v10 = vld [vmem:[#allocation5 + $0x28] sm:$0xff]   ;;  %s2213_s10 = scalar_lea.vmem %s2566_s24, 512  ;;  %s2306_s11 = smov [#allocation8]  }
  0x53   : > { %1746 = vmatpush3.bf16.msra.mxu1 %v2012_v3  ;;  %1707 = vmatprep.subr.bf16.mxu0 %v2013_v4  ;;  %v2020_v11 = vld [vmem:[#allocation5 + $0xa8] sm:$0xff]   ;;  %v2021_v12 = vld [vmem:[#allocation5 + $0x60] sm:$0xff]   ;;  %v2025_v16 = vld [vmem:[#allocation5 + $0x58] sm:$0xff]   ;;  %p2214_p4 = scmp.ne.s32.totalorder %s2566_s24, %s2213_s10  ;;  %s2217_s26 = sshll.u32 %s2306_s11, 4  ;;  %s2218_s26 = int_to_ptr.vmem [resolvable:$false] %s2217_s26 }
  0x54   : > { %1747 = vmatprep.subr.bf16.mxu1 %v2014_v5  ;;  %v2022_v13 = vld [vmem:[#allocation5 + $0xe0] sm:$0xff]   ;;  %v2026_v17 = vld [vmem:[#allocation5 + $0xd8] sm:$0xff]   ;;  %v2029_v20 = vld [vmem:[#allocation5 + $0x50] sm:$0xff]   ;;  %s2219_s19 = scalar_lea.vmem %s2218_s26, 1024  ;;  %p2220_p10 = scmp.lt.s32.totalorder %s2566_s24, %s2218_s26 }
  0x55   : > { %v2023_v14 = vld [vmem:[#allocation5 + $0x20] sm:$0xff]   ;;  %v2027_v18 = vld [vmem:[#allocation5 + $0x18] sm:$0xff]   ;;  %v2030_v21 = vld [vmem:[#allocation5 + $0xd0] sm:$0xff]   ;;  %p2215_p8 = pnand %p2214_p4, %p2423_p12  ;;  %p2221_p2 = scmp.lt.s32.totalorder %s2219_s19, %s2213_s10 }
  0x56   : > { %1708 = vmatpush3.bf16.msra.mxu0 %v2015_v6  ;;  %v2024_v15 = vld [vmem:[#allocation5 + $0xa0] sm:$0xff]   ;;  %v2028_v19 = vld [vmem:[#allocation5 + $0x98] sm:$0xff]   ;;  %v2031_v22 = vld [vmem:[#allocation5 + $0x10] sm:$0xff]  }
  0x57   : > { %1748 = vmatpush3.bf16.msra.mxu1 %v2016_v7  ;;  %1709 = vmatprep.subr.bf16.mxu0 %v2017_v8  ;;  %v2032_v23 = vld [vmem:[#allocation5 + $0x90] sm:$0xff]   ;;  %v2033_v24 = vld [vmem:[#allocation5 + $0x48] sm:$0xff]   ;;  %v2037_v28 = vld [vmem:[#allocation5 + $0x40] sm:$0xff]   ;;  %p2216_p13 = pneg %p2215_p8  ;;  %p2222_p3 = por %p2221_p2, %p2220_p10 }
  0x58   : > { %1749 = vmatprep.subr.bf16.mxu1 %v2018_v9  ;;  %v2034_v25 = vld [vmem:[#allocation5 + $0xc8] sm:$0xff]   ;;  %v2038_v29 = vld [vmem:[#allocation5 + $0xc0] sm:$0xff]   ;;  %v2047_v36 = vld [vmem:[#allocation5 + $0x178] sm:$0xff]  }
  0x59   : > { %v2035_v26 = vld [vmem:[#allocation5 + $0x8] sm:$0xff]   ;;  %v2039_v30 = vld [vmem:[#allocation5] sm:$0xff]   ;;  %v2048_v37 = vld [vmem:[#allocation5 + $0x1f8] sm:$0xff]   ;;  %p2223_p0 = pnand %p2222_p3, %p2216_p13 }
  0x5a   : > { %1710 = vmatpush3.bf16.msra.mxu0 %v2019_v10  ;;  %v2036_v27 = vld [vmem:[#allocation5 + $0x88] sm:$0xff]   ;;  %v2040_v31 = vld [vmem:[#allocation5 + $0x80] sm:$0xff]   ;;  %v2049_v38 = vld [vmem:[#allocation5 + $0x138] sm:$0xff]  }
  0x5b   : > { %1750 = vmatpush3.bf16.msra.mxu1 %v2020_v11  ;;  %1711 = vmatprep.subr.bf16.mxu0 %v2021_v12  ;;  %v2041_v32 = vld [vmem:[%s2452_s21] ss:$36 sps:$4 sm:$0xff]   ;;  %v2044_v34 = vld [vmem:[%s2452_s21 + $0x8] ss:$36 sps:$4 sm:$0xff]   ;;  %v2050_v39 = vld [vmem:[#allocation5 + $0x1b8] sm:$0xff]  }
  0x5c   : > { %1751 = vmatprep.subr.bf16.mxu1 %v2022_v13  ;;  %v2043_v33 = vld [vmem:[%s2452_s21 + $0x4] ss:$36 sps:$4 sm:$0xff]   ;;  %v2046_v35 = vld [vmem:[%s2452_s21 + $0xc] ss:$36 sps:$4 sm:$0xff]   ;;  %v2057_v45 = vld [vmem:[%s2452_s21 + $0x54] ss:$36 sps:$4 sm:$0xff]  }
  0x5d   : > { %1077 = vmatprep.mubr.bf16.mxu0 %v2043_v33  ;;  %1142 = vmatprep.mubr.bf16.mxu1 %v2046_v35  ;;  %v2051_v40 = vld [vmem:[#allocation5 + $0x170] sm:$0xff]   ;;  %v2059_v46 = vld [vmem:[%s2452_s21 + $0x48] ss:$36 sps:$4 sm:$0xff]   ;;  %v2065_v52 = vld [vmem:[#allocation5 + $0x160] sm:$0xff]  }
  0x5e   : > { %1712 = vmatpush3.bf16.msra.mxu0 %v2023_v14  ;;  %v2052_v41 = vld [vmem:[#allocation5 + $0x1f0] sm:$0xff]   ;;  %v2061_v48 = vld [vmem:[#allocation5 + $0x168] sm:$0xff]   ;;  %v2066_v53 = vld [vmem:[#allocation5 + $0x1e0] sm:$0xff]  }
  0x5f   : > { %1752 = vmatpush3.bf16.msra.mxu1 %v2024_v15  ;;  %1713 = vmatprep.subr.bf16.mxu0 %v2025_v16  ;;  %v2053_v42 = vld [vmem:[#allocation5 + $0x130] sm:$0xff]   ;;  %v2062_v49 = vld [vmem:[#allocation5 + $0x1e8] sm:$0xff]   ;;  %v2067_v54 = vld [vmem:[#allocation5 + $0x120] sm:$0xff]  }
  0x60   : > { %1753 = vmatprep.subr.bf16.mxu1 %v2026_v17  ;;  %v2054_v43 = vld [vmem:[#allocation5 + $0x1b0] sm:$0xff]   ;;  %v2063_v50 = vld [vmem:[#allocation5 + $0x128] sm:$0xff]   ;;  %v2068_v55 = vld [vmem:[#allocation5 + $0x1a0] sm:$0xff]  }
  0x61   : > { %v2055_v44 = vld [vmem:[%s2452_s21 + $0x4c] ss:$36 sps:$4 sm:$0xff]   ;;  %v2069_v56 = vld [vmem:[%s2452_s21 + $0x94] ss:$36 sps:$4 sm:$0xff]   ;;  %v2071_v57 = vld [vmem:[%s2452_s21 + $0x9c] ss:$36 sps:$4 sm:$0xff]  }
  0x62   : > { %1714 = vmatpush3.bf16.msra.mxu0 %v2027_v18  ;;  %v2060_v47 = vld [vmem:[%s2452_s21 + $0x50] ss:$36 sps:$4 sm:$0xff]   ;;  %v2064_v51 = vld [vmem:[#allocation5 + $0x1a8] sm:$0xff]   ;;  %v2074_v59 = vld [vmem:[%s2452_s21 + $0x98] ss:$36 sps:$4 sm:$0xff]  }
  0x63   : > { %1754 = vmatpush3.bf16.msra.mxu1 %v2028_v19  ;;  %1715 = vmatprep.subr.bf16.mxu0 %v2029_v20  ;;  %v2073_v58 = vld [vmem:[%s2452_s21 + $0x90] ss:$36 sps:$4 sm:$0xff]   ;;  %v2075_v60 = vld [vmem:[#allocation5 + $0x158] sm:$0xff]   ;;  %v2085_v5 = vld [vmem:[%s2452_s21 + $0xe4] ss:$36 sps:$4 sm:$0xff]  }
  0x64   : > { %1755 = vmatprep.subr.bf16.mxu1 %v2030_v21  ;;  %v2076_v61 = vld [vmem:[#allocation5 + $0x1d8] sm:$0xff]   ;;  %v2079_v0 = vld [vmem:[#allocation5 + $0x150] sm:$0xff]   ;;  %v2088_v7 = vld [vmem:[%s2452_s21 + $0xe0] ss:$36 sps:$4 sm:$0xff]  }
  0x65   : > { %v2077_v62 = vld [vmem:[#allocation5 + $0x118] sm:$0xff]   ;;  %v2080_v1 = vld [vmem:[#allocation5 + $0x1d0] sm:$0xff]   ;;  %v2089_v8 = vld [vmem:[#allocation5 + $0x148] sm:$0xff]  }
  0x66   : > { %1716 = vmatpush3.bf16.msra.mxu0 %v2031_v22  ;;  %v2078_v63 = vld [vmem:[#allocation5 + $0x198] sm:$0xff]   ;;  %v2081_v2 = vld [vmem:[#allocation5 + $0x110] sm:$0xff]   ;;  %v2090_v9 = vld [vmem:[#allocation5 + $0x1c8] sm:$0xff]  }
  0x67   : > { %1756 = vmatpush3.bf16.msra.mxu1 %v2032_v23  ;;  %1717 = vmatprep.subr.bf16.mxu0 %v2033_v24  ;;  %v2082_v3 = vld [vmem:[#allocation5 + $0x190] sm:$0xff]   ;;  %v2083_v4 = vld [vmem:[%s2452_s21 + $0xdc] ss:$36 sps:$4 sm:$0xff]   ;;  %v2091_v10 = vld [vmem:[#allocation5 + $0x108] sm:$0xff]  }
  0x68   : > { %1757 = vmatprep.subr.bf16.mxu1 %v2034_v25  ;;  %v2087_v6 = vld [vmem:[%s2452_s21 + $0xd8] ss:$36 sps:$4 sm:$0xff]   ;;  %v2092_v11 = vld [vmem:[#allocation5 + $0x188] sm:$0xff]   ;;  %v2093_v12 = vld [vmem:[#allocation5 + $0x140] sm:$0xff]  }
  0x69   : > { %v2094_v13 = vld [vmem:[#allocation5 + $0x1c0] sm:$0xff]   ;;  %v2097_v16 = vld [vmem:[%s2452_s21 + $0x10] ss:$36 sps:$4 sm:$0xff]   ;;  %v2100_v18 = vld [vmem:[%s2452_s21 + $0x18] ss:$36 sps:$4 sm:$0xff]  }
  0x6a   : > { %1718 = vmatpush3.bf16.msra.mxu0 %v2035_v26  ;;  %v2095_v14 = vld [vmem:[#allocation5 + $0x100] sm:$0xff]   ;;  %v2099_v17 = vld [vmem:[%s2452_s21 + $0x14] ss:$36 sps:$4 sm:$0xff]   ;;  %v2111_v26 = vld [vmem:[#allocation5 + $0x228] sm:$0xff]  }
  0x6b   : > { %1758 = vmatpush3.bf16.msra.mxu1 %v2036_v27  ;;  %1719 = vmatprep.subr.bf16.mxu0 %v2037_v28  ;;  %v2096_v15 = vld [vmem:[#allocation5 + $0x180] sm:$0xff]   ;;  %v2103_v20 = vld [vmem:[#allocation5 + $0x238] sm:$0xff]   ;;  %v2104_v21 = vld [vmem:[#allocation5 + $0x230] sm:$0xff]  }
  0x6c   : > { %1759 = vmatprep.subr.bf16.mxu1 %v2038_v29  ;;  %v2102_v19 = vld [vmem:[%s2452_s21 + $0x1c] ss:$36 sps:$4 sm:$0xff]   ;;  %v2107_v23 = vld [vmem:[%s2452_s21 + $0x64] ss:$36 sps:$4 sm:$0xff]   ;;  %v2115_v28 = vld [vmem:[%s2452_s21 + $0xac] ss:$36 sps:$4 sm:$0xff]  }
  0x6d   : > { %v2105_v22 = vld [vmem:[%s2452_s21 + $0x5c] ss:$36 sps:$4 sm:$0xff]   ;;  %v2113_v27 = vld [vmem:[%s2452_s21 + $0xa4] ss:$36 sps:$4 sm:$0xff]   ;;  %v2121_v33 = vld [vmem:[%s2452_s21 + $0xec] ss:$36 sps:$4 sm:$0xff]  }
  0x6e   : > { %1720 = vmatpush3.bf16.msra.mxu0 %v2039_v30  ;;  %v2109_v24 = vld [vmem:[%s2452_s21 + $0x58] ss:$36 sps:$4 sm:$0xff]   ;;  %v2110_v25 = vld [vmem:[%s2452_s21 + $0x60] ss:$36 sps:$4 sm:$0xff]   ;;  %v2120_v35 = vld [vmem:[#allocation5 + $0x210] sm:$0xff]  }
  0x6f   : > { %1760 = vmatpush3.bf16.msra.mxu1 %v2040_v31  ;;  %1785 = vmatprep.subr.bf16.mxu0 %v2047_v36  ;;  %v2112_v29 = vld [vmem:[#allocation5 + $0x220] sm:$0xff]   ;;  %v2118_v31 = vld [vmem:[%s2452_s21 + $0xa8] ss:$36 sps:$4 sm:$0xff]  }
  0x70   : > { %1825 = vmatprep.subr.bf16.mxu1 %v2048_v37  ;;  %v2117_v30 = vld [vmem:[%s2452_s21 + $0xa0] ss:$36 sps:$4 sm:$0xff]   ;;  %v2125_v36 = vld [vmem:[%s2452_s21 + $0xe8] ss:$36 sps:$4 sm:$0xff]  }
  0x71   : > { %1078 = vmatmul.mubr.bf16.vlgmr.msra.gmra.mxu0 %v2041_v32  ;;  %v2119_v32 = vld [vmem:[#allocation5 + $0x218] sm:$0xff]   ;;  %v2127_v37 = vld [vmem:[#allocation5 + $0x208] sm:$0xff]  }
  0x72   : > { %1143 = vmatmul.mubr.bf16.vlgmr.msra.gmra.mxu1 %v2044_v34  ;;  %1786 = vmatpush3.bf16.msra.mxu0 %v2049_v38  ;;  %v2123_v34 = vld [vmem:[%s2452_s21 + $0xf4] ss:$36 sps:$4 sm:$0xff]  }
  0x73   : > { %1826 = vmatpush3.bf16.msra.mxu1 %v2050_v39  ;;  %1787 = vmatprep.subr.bf16.mxu0 %v2051_v40  ;;  %v2126_v38 = vld [vmem:[%s2452_s21 + $0xf0] ss:$36 sps:$4 sm:$0xff]   ;;  %v2129_v39 = vld [vmem:[%s2452_s21 + $0x20] ss:$36 sps:$4 sm:$0xff]  }
  0x74   : > { %1827 = vmatprep.subr.bf16.mxu1 %v2052_v41  ;;  %1085 = vmatprep.mubr.bf16.mxu0 %v2055_v44  ;;  %v2130_v40 = vld [vmem:[%s2452_s21 + $0xb0] ss:$36 sps:$4 sm:$0xff]   ;;  %v2128_v41 = vld [vmem:[#allocation5 + $0x200] sm:$0xff]  }
  0x75   : > { %1150 = vmatprep.mubr.bf16.mxu1 %v2057_v45 }
  0x76   : > { %1788 = vmatpush3.bf16.msra.mxu0 %v2053_v42  ;;  %v2131_v42 = vld [vmem:[%s2452_s21 + $0x68] ss:$36 sps:$4 sm:$0xff]  }
  0x77   : > { %1828 = vmatpush3.bf16.msra.mxu1 %v2054_v43  ;;  %1789 = vmatprep.subr.bf16.mxu0 %v2061_v48  ;;  %v2132_v43 = vld [vmem:[%s2452_s21 + $0xf8] ss:$36 sps:$4 sm:$0xff]  }
  0x78   : > { %1829 = vmatprep.subr.bf16.mxu1 %v2062_v49 }
  0x79   : > { %1086 = vmatmul.mubr.bf16.gmra.mxu0 %v2059_v46 }
  0x7a   : > { %1151 = vmatmul.mubr.bf16.gmra.mxu1 %v2060_v47  ;;  %1790 = vmatpush3.bf16.msra.mxu0 %v2063_v50 }
  0x7b   : > { %1830 = vmatpush3.bf16.msra.mxu1 %v2064_v51  ;;  %1791 = vmatprep.subr.bf16.mxu0 %v2065_v52 }
  0x7c   : > { %1831 = vmatprep.subr.bf16.mxu1 %v2066_v53  ;;  %1093 = vmatprep.mubr.bf16.mxu0 %v2069_v56 }
  0x7d   : > { %1158 = vmatprep.mubr.bf16.mxu1 %v2071_v57 }
  0x7e   : > { %1792 = vmatpush3.bf16.msra.mxu0 %v2067_v54 }
  0x7f   : > { %1832 = vmatpush3.bf16.msra.mxu1 %v2068_v55  ;;  %1793 = vmatprep.subr.bf16.mxu0 %v2075_v60 }
  0x80   : > { %1833 = vmatprep.subr.bf16.mxu1 %v2076_v61 }
  0x81   : > { %1094 = vmatmul.mubr.bf16.gmra.mxu0 %v2073_v58 }
  0x82   : > { %1159 = vmatmul.mubr.bf16.gmra.mxu1 %v2074_v59  ;;  %1794 = vmatpush3.bf16.msra.mxu0 %v2077_v62 }
  0x83   : > { %1834 = vmatpush3.bf16.msra.mxu1 %v2078_v63  ;;  %1795 = vmatprep.subr.bf16.mxu0 %v2079_v0 }
  0x84   : > { %1835 = vmatprep.subr.bf16.mxu1 %v2080_v1  ;;  %1101 = vmatprep.mubr.bf16.mxu0 %v2083_v4 }
  0x85   : > { %1166 = vmatprep.mubr.bf16.mxu1 %v2085_v5 }
  0x86   : > { %1796 = vmatpush3.bf16.msra.mxu0 %v2081_v2 }
  0x87   : > { %1836 = vmatpush3.bf16.msra.mxu1 %v2082_v3  ;;  %1797 = vmatprep.subr.bf16.mxu0 %v2089_v8 }
  0x88   : > { %1837 = vmatprep.subr.bf16.mxu1 %v2090_v9 }
  0x89   : > { %1102 = vmatmul.mubr.bf16.gmra.mxu0 %v2087_v6 }
  0x8a   : > { %1167 = vmatmul.mubr.bf16.gmra.mxu1 %v2088_v7  ;;  %1798 = vmatpush3.bf16.msra.mxu0 %v2091_v10 }
  0x8b   : > { %1838 = vmatpush3.bf16.msra.mxu1 %v2092_v11  ;;  %1799 = vmatprep.subr.bf16.mxu0 %v2093_v12 }
  0x8c   : > { %1839 = vmatprep.subr.bf16.mxu1 %v2094_v13  ;;  %1207 = vmatprep.mubr.bf16.mxu0 %v2099_v17 }
  0x8d   : > { %1272 = vmatprep.mubr.bf16.mxu1 %v2102_v19 }
  0x8e   : > { %1800 = vmatpush3.bf16.msra.mxu0 %v2095_v14 }
  0x8f   : > { %1840 = vmatpush3.bf16.msra.mxu1 %v2096_v15  ;;  %1877 = vmatprep.subr.bf16.mxu0 %v2103_v20 }
  0x90   : > { %1901 = vmatprep.subr.bf16.mxu1 %v2103_v20 }
  0x91   : > { %1208 = vmatmul.mubr.bf16.vlgmr.msra.gmra.mxu0 %v2097_v16 }
  0x92   : > { %1273 = vmatmul.mubr.bf16.vlgmr.msra.gmra.mxu1 %v2100_v18  ;;  %1878 = vmatpush3.bf16.msra.mxu0 %v2103_v20 }
  0x93   : > { %1909 = vmatpush3.bf16.msra.mxu1 %v2103_v20  ;;  %1879 = vmatprep.subr.bf16.mxu0 %v2104_v21 }
  0x94   : > { %1902 = vmatprep.subr.bf16.mxu1 %v2104_v21  ;;  %1215 = vmatprep.mubr.bf16.mxu0 %v2105_v22 }
  0x95   : > { %1280 = vmatprep.mubr.bf16.mxu1 %v2107_v23 }
  0x96   : > { %1880 = vmatpush3.bf16.msra.mxu0 %v2104_v21 }
  0x97   : > { %1910 = vmatpush3.bf16.msra.mxu1 %v2104_v21  ;;  %1881 = vmatprep.subr.bf16.mxu0 %v2111_v26 }
  0x98   : > { %1903 = vmatprep.subr.bf16.mxu1 %v2111_v26 }
  0x99   : > { %1216 = vmatmul.mubr.bf16.gmra.mxu0 %v2109_v24 }
  0x9a   : > { %1281 = vmatmul.mubr.bf16.gmra.mxu1 %v2110_v25  ;;  %1223 = vmatprep.mubr.bf16.mxu0 %v2113_v27 }
  0x9b   : > { %1882 = vmatpush3.bf16.msra.mxu0 %v2111_v26  ;;  %1288 = vmatprep.mubr.bf16.mxu1 %v2115_v28 }
  0x9c   : > { %1911 = vmatpush3.bf16.msra.mxu1 %v2111_v26  ;;  %1883 = vmatprep.subr.bf16.mxu0 %v2112_v29 }
  0x9d   : > { %1904 = vmatprep.subr.bf16.mxu1 %v2112_v29 }
  0x9f   : > { %1884 = vmatpush3.bf16.msra.mxu0 %v2112_v29 }
  0xa0   : > { %1912 = vmatpush3.bf16.msra.mxu1 %v2112_v29  ;;  %1885 = vmatprep.subr.bf16.mxu0 %v2119_v32 }
  0xa1   : > { %1224 = vmatmul.mubr.bf16.gmra.mxu0 %v2117_v30  ;;  %1905 = vmatprep.subr.bf16.mxu1 %v2119_v32  ;;  %v1551_v30 = vld [vmem:[#allocation7] ss:$0 sm:$0xff] }
  0xa2   : > { %1289 = vmatmul.mubr.bf16.gmra.mxu1 %v2118_v31  ;;  %1231 = vmatprep.mubr.bf16.mxu0 %v2121_v33 }
  0xa3   : > { %1886 = vmatpush3.bf16.msra.mxu0 %v2119_v32  ;;  %1296 = vmatprep.mubr.bf16.mxu1 %v2123_v34 }
  0xa4   : > { %1913 = vmatpush3.bf16.msra.mxu1 %v2119_v32  ;;  %1887 = vmatprep.subr.bf16.mxu0 %v2120_v35 }
  0xa5   : > { %1906 = vmatprep.subr.bf16.mxu1 %v2120_v35 }
  0xa7   : > { %1888 = vmatpush3.bf16.msra.mxu0 %v2120_v35 }
  0xa8   : > { %1914 = vmatpush3.bf16.msra.mxu1 %v2120_v35  ;;  %1889 = vmatprep.subr.bf16.mxu0 %v2127_v37 }
  0xa9   : > { %1232 = vmatmul.mubr.bf16.gmra.mxu0 %v2125_v36  ;;  %1907 = vmatprep.subr.bf16.mxu1 %v2127_v37 }
  0xaa   : > { %1297 = vmatmul.mubr.bf16.gmra.mxu1 %v2126_v38  ;;  %1893 = vmatprep.mubr.bf16.mxu0 %v2129_v39 }
  0xab   : > { %1890 = vmatpush3.bf16.msra.mxu0 %v2127_v37  ;;  %1897 = vmatprep.mubr.bf16.mxu1 %v2130_v40 }
  0xac   : > { %1915 = vmatpush3.bf16.msra.mxu1 %v2127_v37  ;;  %1891 = vmatprep.subr.bf16.mxu0 %v2128_v41 }
  0xad   : > { %1908 = vmatprep.subr.bf16.mxu1 %v2128_v41 }
  0xaf   : > { %1892 = vmatpush3.bf16.msra.mxu0 %v2128_v41 }
  0xb0   : > { %1916 = vmatpush3.bf16.msra.mxu1 %v2128_v41 }
  0xb2   : > { %1894 = vmatmul.mubr.bf16.vlgmr.msra.gmra.mxu0 %v2131_v42 }
  0xb3   : > { %1898 = vmatmul.mubr.bf16.vlgmr.msra.gmra.mxu1 %v2132_v43 }
 0x131   : > { %v1721_v44 = vpop.f32.mrf.mxu0 }
 0x132   : > { %v1761_v45 = vpop.f32.mrf.mxu1 }
 0x133   : > { %v1722_v46 = vpop.f32.mrf.mxu0 }
 0x134   : > { %v1762_v47 = vpop.f32.mrf.mxu1  ;;  %v1723_v29 = vadd.f32 %v1722_v46, %v1721_v44 }
 0x135   : > { %v1724_v48 = vpop.f32.mrf.mxu0  ;;  %v1763_v42 = vadd.f32 %v1762_v47, %v1761_v45 }
 0x136   : > { %v2498_v49 = vpop.f32.mrf.mxu1  ;;  %v1080_v38 = vadd.f32 %v1723_v29, %v1551_v30 }
 0x137   : > { %v1725_v50 = vpop.f32.mrf.mxu0 }
 0x138   : > { %v2500_v51 = vpop.f32.mrf.mxu1  ;;  %v1726_v33 = vadd.f32 %v1725_v50, %v1724_v48  ;;  %v1145_v48 = vadd.f32 %v1763_v42, %v1080_v38 }
 0x139   : > { %v1727_v52 = vpop.f32.mrf.mxu0 }
 0x13a   : > { %v2502_v53 = vpop.f32.mrf.mxu1 }
 0x13b   : > { %v1728_v54 = vpop.f32.mrf.mxu0 }
 0x13c   : > { %v1768_v55 = vpop.f32.mrf.mxu1  ;;  %v1729_v34 = vadd.f32 %v1728_v54, %v1727_v52  ;;  %v1766_v52 = vadd.f32 %v2500_v51, %v2498_v49 }
 0x13d   : > { %v1730_v56 = vpop.f32.mrf.mxu0  ;;  %v1769_v54 = vadd.f32 %v1768_v55, %v2502_v53 }
 0x13e   : > { %v2504_v57 = vpop.f32.mrf.mxu1 }
 0x13f   : > { %v1731_v58 = vpop.f32.mrf.mxu0 }
 0x140   : > { %v2506_v59 = vpop.f32.mrf.mxu1  ;;  %v1732_v39 = vadd.f32 %v1731_v58, %v1730_v56 }
 0x141   : > { %v1733_v60 = vpop.f32.mrf.mxu0  ;;  %v1772_v45 = vadd.f32 %v2506_v59, %v2504_v57 }
 0x142   : > { %v2508_v61 = vpop.f32.mrf.mxu1  ;;  %v1091_v50 = vadd.f32 %v1732_v39, %v1551_v30 }
 0x143   : > { %v1734_v62 = vpop.f32.mrf.mxu0 }
 0x144   : > { %v2510_v63 = vpop.f32.mrf.mxu1  ;;  %v1735_v44 = vadd.f32 %v1734_v62, %v1733_v60  ;;  %v1156_v38 = vadd.f32 %v1772_v45, %v1091_v50 }
 0x145   : > { %v1736_v0 = vpop.f32.mrf.mxu0  ;;  %v1775_v55 = vadd.f32 %v2510_v63, %v2508_v61 }
 0x146   : > { %v2512_v1 = vpop.f32.mrf.mxu1  ;;  %v1096_v29 = vadd.f32 %v1735_v44, %v1551_v30 }
 0x147   : > { %v1737_v2 = vpop.f32.mrf.mxu0 }
 0x148   : > { %v2514_v3 = vpop.f32.mrf.mxu1  ;;  %v1738_v56 = vadd.f32 %v1737_v2, %v1736_v0 }
 0x149   : > { %v1739_v4 = vpop.f32.mrf.mxu0 }
 0x14a   : > { %v1779_v5 = vpop.f32.mrf.mxu1  ;;  %v1099_v0 = vadd.f32 %v1738_v56, %v1551_v30 }
 0x14b   : > { %v1740_v6 = vpop.f32.mrf.mxu0 }
 0x14c   : > { %v1780_v7 = vpop.f32.mrf.mxu1  ;;  %v1741_v35 = vadd.f32 %v1740_v6, %v1739_v4 }
 0x14d   : > { %v1742_v8 = vpop.f32.mrf.mxu0  ;;  %v1781_v58 = vadd.f32 %v1780_v7, %v1779_v5 }
 0x14e   : > { %v1782_v9 = vpop.f32.mrf.mxu1  ;;  %v1104_v46 = vadd.f32 %v1741_v35, %v1551_v30 }
 0x14f   : > { %v1743_v10 = vpop.f32.mrf.mxu0 }
 0x150   : > { %v1783_v11 = vpop.f32.mrf.mxu1  ;;  %v1744_v43 = vadd.f32 %v1743_v10, %v1742_v8 }
 0x151   : > { %v1801_v12 = vpop.f32.mrf.mxu0  ;;  %v1784_v49 = vadd.f32 %v1783_v11, %v1782_v9 }
 0x152   : > { %v2516_v13 = vpop.f32.mrf.mxu1  ;;  %v1107_v47 = vadd.f32 %v1744_v43, %v1551_v30 }
 0x153   : > { %v1802_v14 = vpop.f32.mrf.mxu0 }
 0x154   : > { %v2518_v15 = vpop.f32.mrf.mxu1  ;;  %v1803_v51 = vadd.f32 %v1802_v14, %v1801_v12  ;;  %v1172_v7 = vadd.f32 %v1784_v49, %v1107_v47 }
 0x155   : > { %v2520_v16 = vpop.f32.mrf.mxu0 }
 0x156   : > { %v2522_v17 = vpop.f32.mrf.mxu1  ;;  %v1210_v14 = vadd.f32 %v1803_v51, %v1145_v48 }
 0x157   : > { %2633 = vst [vmem:[#allocation12_spill] sm:$0xff] %v2522_v17  ;;  %v1805_v18 = vpop.f32.mrf.mxu0  ;;  %v1088_v17 = vadd.f32 %v1729_v34, %v1551_v30 }
 0x158   : > { %v2524_v19 = vpop.f32.mrf.mxu1 }
 0x159   : > { %2634 = vst [vmem:[#allocation13_spill] sm:$0xff] %v2524_v19  ;;  %v1807_v20 = vpop.f32.mrf.mxu0  ;;  %v1083_v19 = vadd.f32 %v1726_v33, %v1551_v30  ;;  %v1153_v10 = vadd.f32 %v1769_v54, %v1088_v17  ;;  %v1169_v33 = vadd.f32 %v1781_v58, %v1104_v46 }
 0x15a   : > { %v2526_v21 = vpop.f32.mrf.mxu1 }
 0x15b   : > { %v1808_v22 = vpop.f32.mrf.mxu0  ;;  %v1148_v8 = vadd.f32 %v1766_v52, %v1083_v19  ;;  %v1806_v19 = vadd.f32 %v1805_v18, %v2520_v16 }
 0x15c   : > { %v2528_v23 = vpop.f32.mrf.mxu1  ;;  %v1809_v60 = vadd.f32 %v1808_v22, %v1807_v20  ;;  %v1161_v22 = vadd.f32 %v1775_v55, %v1096_v29 }
 0x15d   : > { %v1810_v24 = vpop.f32.mrf.mxu0  ;;  %v1849_v61 = vadd.f32 %v2528_v23, %v2526_v21  ;;  %v1213_v39 = vadd.f32 %v1806_v19, %v1148_v8 }
 0x15e   : > { %v2530_v25 = vpop.f32.mrf.mxu1  ;;  %v1218_v17 = vadd.f32 %v1809_v60, %v1153_v10  ;;  %v2639_v46 = vld [vmem:[#allocation12_spill] sm:$0xff] }
 0x15f   : > { %v1811_v26 = vpop.f32.mrf.mxu0 }
 0x160   : > { %v2532_v27 = vpop.f32.mrf.mxu1  ;;  %v1812_v53 = vadd.f32 %v1811_v26, %v1810_v24  ;;  %v2640_v48 = vld [vmem:[#allocation13_spill] sm:$0xff] }
 0x161   : > { %2635 = vst [vmem:[#allocation14_spill] sm:$0xff] %v2532_v27  ;;  %v1813_v28 = vpop.f32.mrf.mxu0  ;;  %v1846_v50 = vadd.f32 %v2640_v48, %v2639_v46 }
 0x162   : > { %v2534_v31 = vpop.f32.mrf.mxu1  ;;  %v1221_v63 = vadd.f32 %v1812_v53, %v1156_v38 }
 0x163   : > { %2636 = vst [vmem:[#allocation15_spill] sm:$0xff] %v2534_v31  ;;  %v1814_v32 = vpop.f32.mrf.mxu0  ;;  %v1278_v47 = vadd.f32 %v1846_v50, %v1213_v39 }
 0x164   : > { %v2536_v36 = vpop.f32.mrf.mxu1  ;;  %v1815_v2 = vadd.f32 %v1814_v32, %v1813_v28  ;;  %v1843_v32 = vadd.f32 %v2518_v15, %v2516_v13 }
 0x165   : > { %v1816_v37 = vpop.f32.mrf.mxu0 }
 0x166   : > { %v2538_v40 = vpop.f32.mrf.mxu1  ;;  %v1226_v28 = vadd.f32 %v1815_v2, %v1161_v22  ;;  %v1275_v54 = vadd.f32 %v1843_v32, %v1210_v14 }
 0x167   : > { %v1817_v41 = vpop.f32.mrf.mxu0 }
 0x168   : > { %v2540_v27 = vpop.f32.mrf.mxu1  ;;  %v1818_v9 = vadd.f32 %v1817_v41, %v1816_v37  ;;  %v1283_v37 = vadd.f32 %v1849_v61, %v1218_v17 }
 0x169   : > { %v1819_v31 = vpop.f32.mrf.mxu0  ;;  %v1858_v15 = vadd.f32 %v2540_v27, %v2538_v40 }
 0x16a   : > { %v1859_v4 = vpop.f32.mrf.mxu1  ;;  %v2638_v42 = vld [vmem:[#allocation15_spill] sm:$0xff] }
 0x16b   : > { %v1820_v6 = vpop.f32.mrf.mxu0  ;;  %v1855_v21 = vadd.f32 %v2536_v36, %v2638_v42 }
 0x16c   : > { %v1821_v62 = vadd.f32 %v1820_v6, %v1819_v31  ;;  %v1860_v34 = vpop.f32.mrf.mxu1  ;;  %v1778_v31 = vadd.f32 %v2514_v3, %v2512_v1  ;;  %v2637_v1 = vld [vmem:[#allocation14_spill] sm:$0xff] }
 0x16d   : > { %v1822_v35 = vpop.f32.mrf.mxu0  ;;  %v1861_v11 = vadd.f32 %v1860_v34, %v1859_v4  ;;  %v1852_v3 = vadd.f32 %v2637_v1, %v2530_v25  ;;  %v1291_v58 = vadd.f32 %v1855_v21, %v1226_v28 }
 0x16e   : > { %v1234_v5 = vadd.f32 %v1821_v62, %v1169_v33  ;;  %v1862_v57 = vpop.f32.mrf.mxu1  ;;  %v1164_v26 = vadd.f32 %v1778_v31, %v1099_v0 }
 0x16f   : > { %v1823_v59 = vpop.f32.mrf.mxu0  ;;  %v1286_v13 = vadd.f32 %v1852_v3, %v1221_v63 }
 0x170   : > { %v1824_v20 = vadd.f32 %v1823_v59, %v1822_v35  ;;  %v1863_v12 = vpop.f32.mrf.mxu1  ;;  %v1299_v18 = vadd.f32 %v1861_v11, %v1234_v5  ;;  %v1229_v23 = vadd.f32 %v1818_v9, %v1164_v26 }
 0x171   : > { %v1864_v30 = vadd.f32 %v1863_v12, %v1862_v57 }
 0x172   : > { %v1237_v24 = vadd.f32 %v1824_v20, %v1172_v7  ;;  %v1895_v16 = vpop.f32.mrf.mxu0  ;;  %v1294_v10 = vadd.f32 %v1858_v15, %v1229_v23 }
 0x173   : > { %v1899_v41 = vpop.f32.mrf.mxu1  ;;  %v1348_v52 = vadd.f32 %v1895_v16, %v1283_v37 }
 0x174   : > { %v1339_v43 = vpop.f32.mrf.mxu0  ;;  %v1302_v44 = vadd.f32 %v1864_v30, %v1237_v24  ;;  %v1364_v25 = vadd.f32 %v1899_v41, %v1299_v18 }
 0x175   : > { %v1355_v56 = vpop.f32.mrf.mxu1  ;;  %v1340_v6 = vadd.f32 %v1339_v43, %v1275_v54  ;;  %v1372_v29 = vmax.f32 %v1348_v52, 0.0 }
 0x176   : > { %v1896_v4 = vpop.f32.mrf.mxu0  ;;  %v1356_v60 = vadd.f32 %v1355_v56, %v1291_v58  ;;  %v1376_v38 = vmax.f32 %v1364_v25, 0.0 }
 0x177   : > { %v1351_v45 = vadd.f32 %v1896_v4, %v1286_v13  ;;  %v1900_v36 = vpop.f32.mrf.mxu1  ;;  %v1370_v49 = vmax.f32 %v1340_v6, 0.0 }
 0x178   : > { %v1367_v62 = vadd.f32 %v1900_v36, %v1302_v44  ;;  %v1342_v8 = vpop.f32.mrf.mxu0  ;;  %v1374_v55 = vmax.f32 %v1356_v60, 0.0 }
 0x179   : > { %v1373_v33 = vmax.f32 %v1351_v45, 0.0  ;;  %v1343_v34 = vadd.f32 %v1342_v8, %v1278_v47  ;;  %v1358_v35 = vpop.f32.mrf.mxu1 }
 0x17a   : > { %v1377_v27 = vmax.f32 %v1367_v62, 0.0  ;;  %v1359_v40 = vadd.f32 %v1358_v35, %v1294_v10 }
 0x17b   : > { %v1690_v51 = vpack.c.bf16 %v1373_v33, %v1372_v29  ;;  %v1371_v53 = vmax.f32 %v1343_v34, 0.0 }
 0x17c   : > { %v1700_v0 = vpack.c.bf16 %v1377_v27, %v1376_v38  ;;  %v1375_v2 = vmax.f32 %v1359_v40, 0.0 }
 0x17d   : > { %1702 = vst [vmem:[%s234_s22 + $0x8] sm:$0xff] %v1690_v51   ;;  %v1685_v5 = vpack.c.bf16 %v1371_v53, %v1370_v49 }
 0x17e   : > { %1704 = vst [vmem:[%s234_s22 + $0x18] sm:$0xff] %v1700_v0   ;;  %v1695_v57 = vpack.c.bf16 %v1375_v2, %v1374_v55 }
 0x17f   : > { %1686 = vst [vmem:[%s234_s22] sm:$0xff] %v1685_v5  }
 0x180   : > { %1703 = vst [vmem:[%s234_s22 + $0x10] sm:$0xff] %v1695_v57  }
 0x181   : > { %2226 = shalt.err (!%p2223_p0)
}
 0x182   : > { %s2227_s28 = scalar_lea.hbm %s2571_s9, 512  ;;  %s2231_s7 = scalar_lea.hbm %s2621_s3, 6144 }
 0x183   : > { %p2228_p5 = scmp.ne.s32.totalorder %s2571_s9, %s2227_s28  ;;  %p2232_p11 = scmp.lt.s32.totalorder %s2571_s9, %s2621_s3 }
 0x184   : > { %p2233_p7 = scmp.lt.s32.totalorder %s2231_s7, %s2227_s28 }
 0x185   : > { %p2229_p1 = pnand %p2228_p5, %p2423_p12 }
 0x186   : > { %p2234_p9 = por %p2233_p7, %p2232_p11 }
 0x187   : > { %p2230_p6 = pneg %p2229_p1 }
 0x189   : > { %p2235_p4 = pnand %p2234_p9, %p2230_p6 }
 0x18b   : > { %2238 = shalt.err (!%p2235_p4)
}
 0x18c   : > { %s2307_s22 = smov 64   ;;  %s2308_s29 = smov 4  }
 0x18d   : > { %1930 = dma.vmem_to_hbm [thread:$0]  (%p2423_p12), %s2566_s24, 512, %s2571_s9, %s1419_s15, %s2307_s22, %s2307_s22, %s2308_s29  }
 0x18e PF: > { %p1952_p8 = scmp.ge.s32.totalorder %s2297_s17, 2  ;;  %s1449_s6 = sand.u32 1, %s2277_s12  }
 0x18f   : > { %p2641_p13 = scmp.ne.s32.totalorder %s2627_s23, 0  ;;  %s1450_s8 = scalar_lea.sflag [#allocation4], %s1449_s6 }
 0x191   : > { %p1944_p10 = pnand %p1952_p8, %p2641_p13 }
 0x193   : > { %p1945_p2 = pneg %p1944_p10 }
 0x195   : > { %2272 = dma.done.wait (%p1945_p2), %s1450_s8, 512  }
 0x196   : > { %2274 = vsyncadd (%p1945_p2), %s1450_s8, 4294966784  ;;  %s20_s17 = sadd.s32 1, %s2297_s17   ;;  %s2642_s12 = smov %s2281_s13 }
 0x197   : > { %p17_p3 = scmp.ge.s32.totalorder %s20_s17, 14   ;;  %s2643_s13 = smov %s2285_s14 }
 0x198   : > { %s2644_s14 = smov %s2435_s30  ;;  %s2645_s15 = smov %s2293_s16 }
 0x199   : > { %s2646_s16 = smov %s2648_s18  ;;  %19 = sbr.rel (!%p17_p3) target bundleno = 7 (0x7), region = 85 }
 0x19e   :  { %1455 = vsyncpa [#allocation3], 1 }
 0x19f   :  { %1457 = vsyncpa [#allocation3 + $0x1], 1 }
 0x1a0   :  { %1458 = vsyncpa [#allocation6], 1 }
 0x1a1   :  { %1459 = vsyncpa [#allocation4], 1 }
 0x1a2   :  { %1461 = vsyncpa [#allocation4 + $0x1], 1 }

</bundles_post_ra>
